<compile_context>
chip_gen: v5e
topology: v5e:2x2
jax: 0.10.0
libtpu: 0.0.40
codegen_flags: <defaults>
</compile_context>

<pallas_src>
import math

import jax
import jax.numpy as jnp
import numpy as np
from jax.experimental import pallas as pl
from jax.experimental.pallas import tpu as pltpu


# ---------------------------------------------------------------------------
# Gate: softmax(z.real @ cos + z.imag @ sin, axis=-1) -> (D1, C) float32
# ---------------------------------------------------------------------------
def _gate(zr, zi, cos, sin):
    a = (jnp.dot(zr, cos, preferred_element_type=jnp.float32)
         + jnp.dot(zi, sin, preferred_element_type=jnp.float32))
    a = a - jnp.max(a, axis=-1, keepdims=True)
    e = jnp.exp(a)
    return e / jnp.sum(e, axis=-1, keepdims=True)


# ---------------------------------------------------------------------------
# Fused production kernel: one (B, time-tile) grid step per invocation.
#   out[o, t] = sum_c softmax_gate[o, c] * x[c, t]
# Gate inputs have constant index_maps -> DMA'd once; recompute per step is
# free filler on non-bottleneck units (kernel is HBM-bound).
# ---------------------------------------------------------------------------
def _fused_mix_kernel(zr_ref, zi_ref, cos_ref, sin_ref, x_ref, o_ref):
    w = _gate(zr_ref[...], zi_ref[...], cos_ref[...], sin_ref[...])
    o_ref[...] = jnp.dot(w.astype(x_ref.dtype), x_ref[...],
                         preferred_element_type=jnp.float32).astype(o_ref.dtype)


# ---------------------------------------------------------------------------
# Fused small-problem kernel: whole (B, C, T) and (B, D1, T) live in VMEM,
# single program, no grid, no wrapper transposes.
# ---------------------------------------------------------------------------
def _fused_whole_kernel(zr_ref, zi_ref, cos_ref, sin_ref, x_ref, o_ref):
    w = _gate(zr_ref[...], zi_ref[...], cos_ref[...], sin_ref[...])
    wc = w.astype(x_ref.dtype)
    for b in range(x_ref.shape[0]):          # B is static & tiny -> unrolled
        o_ref[b] = jnp.dot(wc, x_ref[b],
                           preferred_element_type=jnp.float32).astype(o_ref.dtype)


# ---------------------------------------------------------------------------
# Tiling helpers
# ---------------------------------------------------------------------------
def _vmem_budget_bytes():
    """Chip-aware VMEM budget for pipelined blocks (conservative fallback)."""
    try:
        return int(0.6 * pltpu.get_tpu_info().vmem_capacity_bytes)
    except Exception:
        return 40 * 1024 * 1024   # safe on v7x (64 MiB/core), loose on v5e/v6e


def _pick_lane_tile(T, B, per_lane_bytes, resident_bytes, target, budget):
    """Largest multiple-of-128 divisor of T that (a) is <= target, (b) keeps the
    double-buffered block footprint inside `budget`, and (c) leaves >= 2 total
    grid steps so v7x's second TensorCore gets work."""
    divs = [d for d in range(128, T + 1, 128) if T % d == 0]

    def fits(d):
        return 2 * per_lane_bytes * d + 2 * resident_bytes + (2 << 20) <= budget

    cand = [d for d in divs if d <= target and fits(d)]
    tn = max(cand) if cand else 128
    if B * (T // tn) < 2:
        smaller = [d for d in divs if d < tn and B * (T // d) >= 2 and fits(d)]
        if smaller:
            tn = max(smaller)
    return tn


# ---------------------------------------------------------------------------
# Wrapper
# ---------------------------------------------------------------------------
def spatial_attention(z_real, z_imag, cos, sin, X, *, lane_tile=16384,
                      out_dtype=None):
    """X: (B, C, T) -> (B, D1, T)  (eval-mode forward).

    Pass bf16 X (and/or out_dtype=jnp.bfloat16) to halve HBM traffic on
    bandwidth-starved chips (v5e); f32 default preserves module numerics.
    """
    B, C, T = X.shape
    D1, K2 = z_real.shape
    out_dtype = X.dtype if out_dtype is None else jnp.dtype(out_dtype)

    gate_in = (z_real, z_imag, cos, sin)
    gate_bytes = int(sum(int(np.prod(a.shape)) * a.dtype.itemsize for a in gate_in))
    out_bytes = B * D1 * T * jnp.dtype(out_dtype).itemsize
    x_bytes = B * C * T * X.dtype.itemsize

    if T >= 128 and T % 128 == 0:
        # --- production path: (batch, time-tile) grid, lane-dense tiles,
        #     transpose folded into BlockSpecs (pl.Squeezed batch dim). ------
        budget = _vmem_budget_bytes()
        per_lane = C * X.dtype.itemsize + D1 * jnp.dtype(out_dtype).itemsize
        tn = _pick_lane_tile(T, B, per_lane, gate_bytes, lane_tile, budget)
        grid = (B, T // tn)
        steps = B * (T // tn)
        need = 2 * per_lane * tn + 2 * gate_bytes + (2 << 20)
        vmem_limit = int(min(budget, max(16 << 20, need)))

        cost = pl.CostEstimate(
            flops=2 * D1 * C * B * T + steps * 2 * 2 * D1 * K2 * C,
            transcendentals=steps * D1 * C,
            bytes_accessed=x_bytes + out_bytes + gate_bytes,
        )
        const = lambda b, t: (0, 0)
        return pl.pallas_call(
            _fused_mix_kernel,
            out_shape=jax.ShapeDtypeStruct((B, D1, T), out_dtype),
            grid_spec=pltpu.PrefetchScalarGridSpec(
                num_scalar_prefetch=0,
                grid=grid,
                in_specs=[
                    pl.BlockSpec((D1, K2), const),
                    pl.BlockSpec((D1, K2), const),
                    pl.BlockSpec((K2, C), const),
                    pl.BlockSpec((K2, C), const),
                    pl.BlockSpec((pl.Squeezed(), C, tn), lambda b, t: (b, 0, t)),
                ],
                out_specs=pl.BlockSpec((pl.Squeezed(), D1, tn),
                                       lambda b, t: (b, 0, t)),
            ),
            compiler_params=pltpu.CompilerParams(
                dimension_semantics=("parallel", "parallel"),
                vmem_limit_bytes=vmem_limit,
            ),
            cost_estimate=cost,
        )(z_real, z_imag, cos, sin, X)

    if gate_bytes + x_bytes + out_bytes <= 24 * 1024 * 1024:
        # --- small path (e.g. T=8): whole problem in VMEM, one program,
        #     no wrapper transposes / reshapes (no extra HBM round-trips). ---
        vmem = pl.BlockSpec(memory_space=pltpu.MemorySpace.VMEM)
        return pl.pallas_call(
            _fused_whole_kernel,
            out_shape=jax.ShapeDtypeStruct((B, D1, T), out_dtype),
            in_specs=[vmem] * 5,
            out_specs=vmem,
        )(z_real, z_imag, cos, sin, X)

    # --- rare fallback: large T not a multiple of 128 -> pad, run, slice.
    # TODO(synk): a masked-last-tile (pl.cdiv grid) variant would avoid the pad copy.
    Tp = ((T + 127) // 128) * 128
    Xp = jnp.pad(X, ((0, 0), (0, 0), (0, Tp - T)))
    out = spatial_attention(z_real, z_imag, cos, sin, Xp,
                            lane_tile=lane_tile, out_dtype=out_dtype)
    return out[:, :, :T]


def reference(z_real, z_imag, cos, sin, X):
    a = z_real @ cos + z_imag @ sin
    w = jax.nn.softmax(a, axis=-1)
    return jnp.einsum('oi,bit->bot', w, X)


if __name__ == "__main__":
    # Small, deterministic configuration consistent with the module.
    K = 4          # args.K  -> K^2 = 16 Fourier features
    D1 = 32        # args.D1 -> output channels
    C = 16         # num MEG sensors (rows of ch_locations_2d)
    B = 2          # batch

    key = jax.random.PRNGKey(0)
    k_z, k_loc, k_x1, k_x2, k_x3 = jax.random.split(key, 5)

    # z = torch.rand((D1, K^2), dtype=cfloat): real & imag uniform in [0, 1)
    z = jax.random.uniform(k_z, (2, D1, K * K), dtype=jnp.float32)
    z_real, z_imag = z[0], z[1]

    # ch_locations_2d(args): 2D sensor locations in [0, 1)
    loc = jax.random.uniform(k_loc, (C, 2), dtype=jnp.float32)
    x_loc, y_loc = loc[:, 0], loc[:, 1]

    # a = [(k, l) for k in range(K) for l in range(K)]
    kk = jnp.repeat(jnp.arange(K, dtype=jnp.float32), K)
    ll = jnp.tile(jnp.arange(K, dtype=jnp.float32), K)
    phi = 2.0 * math.pi * (jnp.outer(kk, x_loc) + jnp.outer(ll, y_loc))  # (K^2, C)
    cos = jnp.cos(phi).astype(jnp.float32)
    sin = jnp.sin(phi).astype(jnp.float32)

    # --- check 1: tiny-T whole-in-VMEM path (T=8) ----------------------------
    T_small = 8
    X_small = jax.random.normal(k_x1, (B, C, T_small), dtype=jnp.float32)
    out_small = jax.block_until_ready(
        spatial_attention(z_real, z_imag, cos, sin, X_small))
    ref_small = reference(z_real, z_imag, cos, sin, X_small)
    assert out_small.shape == (B, D1, T_small), out_small.shape
    np.testing.assert_allclose(np.asarray(out_small), np.asarray(ref_small),
                               rtol=1e-5, atol=1e-5)

    # --- check 2: gridded, pipelined production path (T multiple of 128) -----
    T_big = 256
    X_big = jax.random.normal(k_x2, (B, C, T_big), dtype=jnp.float32)
    out_big = jax.block_until_ready(
        spatial_attention(z_real, z_imag, cos, sin, X_big))
    ref_big = reference(z_real, z_imag, cos, sin, X_big)
    assert out_big.shape == (B, D1, T_big), out_big.shape
    np.testing.assert_allclose(np.asarray(out_big), np.asarray(ref_big),
                               rtol=1e-5, atol=1e-5)

    # --- check 3: non-power-of-two multiple of 128 (exercises new tile picker)
    T_odd = 384
    X_odd = jax.random.normal(k_x3, (B, C, T_odd), dtype=jnp.float32)
    out_odd = jax.block_until_ready(
        spatial_attention(z_real, z_imag, cos, sin, X_odd))
    ref_odd = reference(z_real, z_imag, cos, sin, X_odd)
    assert out_odd.shape == (B, D1, T_odd), out_odd.shape
    np.testing.assert_allclose(np.asarray(out_odd), np.asarray(ref_odd),
                               rtol=1e-5, atol=1e-5)

    print("KERNEL_OK")
</pallas_src>

<mosaic_0001>
module attributes {stable_mosaic.version = 11 : i64} {
  func.func @_fused_whole_kernel(%arg0: memref<32x16xf32, #tpu.memory_space<vmem>>, %arg1: memref<32x16xf32, #tpu.memory_space<vmem>>, %arg2: memref<16x16xf32, #tpu.memory_space<vmem>>, %arg3: memref<16x16xf32, #tpu.memory_space<vmem>>, %arg4: memref<2x16x8xf32, #tpu.memory_space<vmem>>, %arg5: memref<2x32x8xf32, #tpu.memory_space<vmem>>) attributes {dimension_semantics = [], scalar_prefetch = 0 : i64, scratch_operands = 0 : i64, tpu.core_type = #tpu.core_type<tc>} {
    %c0 = arith.constant 0 : index
    %c0_0 = arith.constant 0 : index
    %0 = vector.load %arg0[%c0, %c0_0] : memref<32x16xf32, #tpu.memory_space<vmem>>, vector<32x16xf32>
    %c0_1 = arith.constant 0 : index
    %c0_2 = arith.constant 0 : index
    %1 = vector.load %arg1[%c0_1, %c0_2] : memref<32x16xf32, #tpu.memory_space<vmem>>, vector<32x16xf32>
    %c0_3 = arith.constant 0 : index
    %c0_4 = arith.constant 0 : index
    %2 = vector.load %arg2[%c0_3, %c0_4] : memref<16x16xf32, #tpu.memory_space<vmem>>, vector<16x16xf32>
    %c0_5 = arith.constant 0 : index
    %c0_6 = arith.constant 0 : index
    %3 = vector.load %arg3[%c0_5, %c0_6] : memref<16x16xf32, #tpu.memory_space<vmem>>, vector<16x16xf32>
    %cst = arith.constant dense<0.000000e+00> : vector<32x16xf32>
    %4 = tpu.matmul %0, %2, %cst {dimension_numbers = #tpu.dot_dimension_numbers<[1], [0], [0], [1], [0, 0, 1, 1], [], []>} : vector<32x16xf32>, vector<16x16xf32>, vector<32x16xf32> -> vector<32x16xf32>
    %cst_7 = arith.constant dense<0.000000e+00> : vector<32x16xf32>
    %5 = tpu.matmul %1, %3, %cst_7 {dimension_numbers = #tpu.dot_dimension_numbers<[1], [0], [0], [1], [0, 0, 1, 1], [], []>} : vector<32x16xf32>, vector<16x16xf32>, vector<32x16xf32> -> vector<32x16xf32>
    %6 = arith.addf %4, %5 : vector<32x16xf32>
    %cst_8 = arith.constant dense<0xFF800000> : vector<32xf32>
    %7 = vector.multi_reduction <maximumf>, %6, %cst_8 [1] : vector<32x16xf32> to vector<32xf32>
    %8 = vector.shape_cast %7 : vector<32xf32> to vector<32x1xf32>
    %9 = vector.broadcast %8 : vector<32x1xf32> to vector<32x16xf32>
    %10 = arith.subf %6, %9 : vector<32x16xf32>
    %11 = math.exp %10 : vector<32x16xf32>
    %cst_9 = arith.constant dense<0.000000e+00> : vector<32xf32>
    %12 = vector.multi_reduction <add>, %11, %cst_9 [1] : vector<32x16xf32> to vector<32xf32>
    %13 = vector.shape_cast %12 : vector<32xf32> to vector<32x1xf32>
    %14 = vector.broadcast %13 : vector<32x1xf32> to vector<32x16xf32>
    %15 = arith.divf %11, %14 : vector<32x16xf32>
    %c0_10 = arith.constant 0 : index
    %c0_11 = arith.constant 0 : index
    %c0_12 = arith.constant 0 : index
    %16 = vector.load %arg4[%c0_10, %c0_11, %c0_12] : memref<2x16x8xf32, #tpu.memory_space<vmem>>, vector<1x16x8xf32>
    %17 = vector.shape_cast %16 : vector<1x16x8xf32> to vector<16x8xf32>
    %cst_13 = arith.constant dense<0.000000e+00> : vector<32x8xf32>
    %18 = tpu.matmul %15, %17, %cst_13 {dimension_numbers = #tpu.dot_dimension_numbers<[1], [0], [0], [1], [0, 0, 1, 1], [], []>} : vector<32x16xf32>, vector<16x8xf32>, vector<32x8xf32> -> vector<32x8xf32>
    %c0_14 = arith.constant 0 : index
    %c0_15 = arith.constant 0 : index
    %c0_16 = arith.constant 0 : index
    %19 = vector.load %arg5[%c0_14, %c0_15, %c0_16] : memref<2x32x8xf32, #tpu.memory_space<vmem>>, vector<1x32x8xf32>
    %20 = vector.shape_cast %19 : vector<1x32x8xf32> to vector<32x8xf32>
    %21 = vector.shape_cast %18 : vector<32x8xf32> to vector<1x32x8xf32>
    tpu.vector_store %arg5[%c0_14, %c0_15, %c0_16], %21 {strides = array<i32>} : memref<2x32x8xf32, #tpu.memory_space<vmem>>, vector<1x32x8xf32>,
    %c1 = arith.constant 1 : index
    %c0_17 = arith.constant 0 : index
    %c0_18 = arith.constant 0 : index
    %22 = vector.load %arg4[%c1, %c0_17, %c0_18] : memref<2x16x8xf32, #tpu.memory_space<vmem>>, vector<1x16x8xf32>
    %23 = vector.shape_cast %22 : vector<1x16x8xf32> to vector<16x8xf32>
    %cst_19 = arith.constant dense<0.000000e+00> : vector<32x8xf32>
    %24 = tpu.matmul %15, %23, %cst_19 {dimension_numbers = #tpu.dot_dimension_numbers<[1], [0], [0], [1], [0, 0, 1, 1], [], []>} : vector<32x16xf32>, vector<16x8xf32>, vector<32x8xf32> -> vector<32x8xf32>
    %c1_20 = arith.constant 1 : index
    %c0_21 = arith.constant 0 : index
    %c0_22 = arith.constant 0 : index
    %25 = vector.load %arg5[%c1_20, %c0_21, %c0_22] : memref<2x32x8xf32, #tpu.memory_space<vmem>>, vector<1x32x8xf32>
    %26 = vector.shape_cast %25 : vector<1x32x8xf32> to vector<32x8xf32>
    %27 = vector.shape_cast %24 : vector<32x8xf32> to vector<1x32x8xf32>
    tpu.vector_store %arg5[%c1_20, %c0_21, %c0_22], %27 {strides = array<i32>} : memref<2x32x8xf32, #tpu.memory_space<vmem>>, vector<1x32x8xf32>,
    return
  }
}

</mosaic_0001>

<bundles_post_ra>
// kernel: tpu_custom_call.1
= control target key start
LH: loop header
LB: loop body
LE: loop exit
PB: predicated region body
PF: predicated region fallthrough
CT: control target
= control target key end

     0   :  { %vm32_vm0 = vcmask 130048   ;;  %s484_s3 = inlined_call_operand.vmem [shape: f32[16,16], index: 3, kind: input, shape index: {}]   ;;  %s485_s2 = inlined_call_operand.vmem [shape: f32[16,16], index: 2, kind: input, shape index: {}]   ;;  %s486_s1 = inlined_call_operand.vmem [shape: f32[32,16], index: 1, kind: input, shape index: {}]   ;;  %s487_s0 = inlined_call_operand.vmem [shape: f32[32,16], index: 0, kind: input, shape index: {}]   ;;  %s488_s4 = inlined_call_operand.vmem [shape: f32[2,16,8], index: 4, kind: input, shape index: {}]   ;;  %s489_s5 = inlined_call_operand.vmem [shape: f32[2,32,8], index: 5, kind: output, shape index: {}]  }
   0x1   :  { %v31_v0 = vld [vmem:[%s484_s3 + $0x8] sm:$0xff]  ;;  %v30_v2 = vld [vmem:[%s484_s3] sm:$0xff]  ;;  %v26_v8 = vld [vmem:[%s486_s1 + $0x10] sm:$0xff] }
   0x2   :  { %v29_v1 = vld [vmem:[%s485_s2 + $0x8] sm:$0xff]  ;;  %59 = vmatpush.msra.mxu0 %v31_v0  ;;  %v28_v3 = vld [vmem:[%s485_s2] sm:$0xff]  ;;  %v22_v9 = vld [vmem:[%s487_s0 + $0x10] sm:$0xff] }
   0x3   :  { %100 = vmatpush.msra.mxu1 %v29_v1  ;;  %v24_v4 = vld [vmem:[%s486_s1] sm:$0xff]  ;;  %v25_v6 = vld [vmem:[%s486_s1 + $0x8] sm:$0xff]  ;;  %v27_v10 = vld [vmem:[%s486_s1 + $0x18] sm:$0xff] }
   0x4   :  { %v20_v5 = vld [vmem:[%s487_s0] sm:$0xff]  ;;  %60 = vmatpush.msra.mxu0 %v30_v2  ;;  %v21_v7 = vld [vmem:[%s487_s0 + $0x8] sm:$0xff]  ;;  %v23_v11 = vld [vmem:[%s487_s0 + $0x18] sm:$0xff] }
   0x5   :  { %101 = vmatpush.msra.mxu1 %v28_v3  ;;  %300 = vmatmul.msk.f32.vlgmr.msra.gmra.mxu0 %vm32_vm0, %v24_v4  ;;  %v212_v48 = vld [vmem:[%s488_s4 + $0x8] sm:$0xff]  ;;  %v313_v49 = vld [vmem:[%s488_s4 + $0x18] sm:$0xff]  ;;  %v211_v50 = vld [vmem:[%s488_s4] sm:$0xff] }
   0x6   :  { %304 = vmatmul.msk.f32.vlgmr.msra.gmra.mxu1 %vm32_vm0, %v20_v5  ;;  %239 = vmatpush.msra.mxu2 %v212_v48  ;;  %v312_v51 = vld [vmem:[%s488_s4 + $0x10] sm:$0xff] }
   0x7   :  { %276 = vmatpush.msra.mxu3 %v313_v49 }
   0x8   :  { %240 = vmatpush.msra.mxu2 %v211_v50 }
   0x9   :  { %277 = vmatpush.msra.mxu3 %v312_v51 }
   0xd   :  { %301 = vmatmul.msk.f32.gmra.mxu0 %vm32_vm0, %v25_v6 }
   0xe   :  { %305 = vmatmul.msk.f32.gmra.mxu1 %vm32_vm0, %v21_v7 }
  0x15   :  { %302 = vmatmul.msk.f32.gmra.mxu0 %vm32_vm0, %v26_v8 }
  0x16   :  { %306 = vmatmul.msk.f32.gmra.mxu1 %vm32_vm0, %v22_v9 }
  0x1d   :  { %303 = vmatmul.msk.f32.gmra.mxu0 %vm32_vm0, %v27_v10 }
  0x1e   :  { %307 = vmatmul.msk.f32.gmra.mxu1 %vm32_vm0, %v23_v11 }
  0x82   :  { %v62_v12 = vpop.f32.mrf.mxu0 }
  0x83   :  { %v103_v13 = vpop.f32.mrf.mxu1 }
  0x84   :  { %v104_v14 = vadd.f32 %v103_v13, %v62_v12 }
  0x86   :  { %v115_v15 = vsel %vm32_vm0, %v104_v14, -inf }
  0x87   :  { %116 = vmax.xlane.f32.xlu0 %v115_v15 }
  0x8a   :  { %v65_v16 = vpop.f32.mrf.mxu0 }
  0x8b   :  { %v106_v17 = vpop.f32.mrf.mxu1 }
  0x8c   :  { %v107_v18 = vadd.f32 %v106_v17, %v65_v16 }
  0x8e   :  { %v118_v19 = vsel %vm32_vm0, %v107_v18, -inf }
  0x8f   :  { %119 = vmax.xlane.f32.xlu0 %v118_v19 }
  0x92   :  { %v68_v20 = vpop.f32.mrf.mxu0 }
  0x93   :  { %v109_v21 = vpop.f32.mrf.mxu1 }
  0x94   :  { %v110_v22 = vadd.f32 %v109_v21, %v68_v20 }
  0x96   :  { %v121_v23 = vsel %vm32_vm0, %v110_v22, -inf }
  0x97   :  { %122 = vmax.xlane.f32.xlu1 %v121_v23 }
  0x9a   :  { %v71_v24 = vpop.f32.mrf.mxu0 }
  0x9b   :  { %v112_v25 = vpop.f32.mrf.mxu1 }
  0x9c   :  { %v113_v26 = vadd.f32 %v112_v25, %v71_v24 }
  0x9e   :  { %v124_v27 = vsel %vm32_vm0, %v113_v26, -inf }
  0x9f   :  { %125 = vmax.xlane.f32.xlu1 %v124_v27 }
  0xfa   :  { %v117_v28 = vpop.xlane.xlu0 %116 }
  0xfb   :  { %v127_v29 = vsub.f32 %v104_v14, %v117_v28 }
  0xfd   :  { %v131_v30 = vmul.f32 1.442695, %v127_v29 }
  0xff   :  { %322 = vpow2.f32 %v131_v30 }
 0x102   :  { %v120_v31 = vpop.xlane.xlu0 %119 }
 0x103   :  { %v128_v32 = vsub.f32 %v107_v18, %v120_v31 }
 0x105   :  { %v323_v33 = vpop.eup %322  ;;  %v133_v34 = vmul.f32 1.442695, %v128_v32 }
 0x106   :  { %v139_v35 = vsel %vm32_vm0, %v323_v33, 0.0 }
 0x107   :  { %324 = vpow2.f32 %v133_v34  ;;  %140 = vadd.xlane.f32.xlu2 %v139_v35 }
 0x10a   :  { %v123_v36 = vpop.xlane.xlu1 %122 }
 0x10b   :  { %v129_v37 = vsub.f32 %v110_v22, %v123_v36 }
 0x10d   :  { %v417_v38 = vpop.eup %324  ;;  %v135_v39 = vmul.f32 1.442695, %v129_v37 }
 0x10e   :  { %v142_v40 = vsel %vm32_vm0, %v417_v38, 0.0 }
 0x10f   :  { %326 = vpow2.f32 %v135_v39  ;;  %143 = vadd.xlane.f32.xlu2 %v142_v40 }
 0x112   :  { %v126_v41 = vpop.xlane.xlu1 %125 }
 0x113   :  { %v130_v42 = vsub.f32 %v113_v26, %v126_v41 }
 0x115   :  { %v421_v43 = vpop.eup %326  ;;  %v137_v44 = vmul.f32 1.442695, %v130_v42 }
 0x116   :  { %v145_v45 = vsel %vm32_vm0, %v421_v43, 0.0 }
 0x117   :  { %328 = vpow2.f32 %v137_v44  ;;  %146 = vadd.xlane.f32.xlu0 %v145_v45 }
 0x11d   :  { %v425_v46 = vpop.eup %328 }
 0x11e   :  { %v148_v47 = vsel %vm32_vm0, %v425_v46, 0.0 }
 0x11f   :  { %149 = vadd.xlane.f32.xlu1 %v148_v47 }
 0x17a   :  { %v141_v52 = vpop.xlane.xlu2 %140 }
 0x17b   :  { %330 = vrcp.f32 %v141_v52  ;;  %v162_v58 = vand.u32 2147483648, %v141_v52  ;;  %v160_v59 = vand.u32 2147483647, %v141_v52  ;;  %vm156_vm2 = vweird.f32 %v141_v52 }
 0x17d   :  { %v163_v62 = vor.u32 1.1754944e-38, %v162_v58  ;;  %vm161_vm4 = vcmp.eq.f32.partialorder %v160_v59, 8.507059e+37 }
 0x181   :  { %v331_v53 = vpop.eup %330 }
 0x182   :  { %v152_v54 = vmul.f32 %v331_v53, %v141_v52  ;;  %v144_v55 = vpop.xlane.xlu2 %143  ;;  %vm157_vm1 = vweird.f32 %v331_v53 }
 0x183   :  { %332 = vrcp.f32 %v144_v55  ;;  %vm158_vm3 = vmor %vm156_vm2, %vm157_vm1  ;;  %v177_v6 = vand.u32 2147483648, %v144_v55  ;;  %v175_v7 = vand.u32 2147483647, %v144_v55  ;;  %vm171_vm6 = vweird.f32 %v144_v55 }
 0x184   :  { %v153_v56 = vsub.f32 1.0, %v152_v54  ;;  %vm254_vm2 = vcmask 64512  }
 0x185   :  { %v178_v10 = vor.u32 1.1754944e-38, %v177_v6  ;;  %vm176_vm8 = vcmp.eq.f32.partialorder %v175_v7, 8.507059e+37 }
 0x186   :  { %v154_v57 = vmul.f32 %v331_v53, %v153_v56 }
 0x188   :  { %v155_v60 = vadd.f32 %v331_v53, %v154_v57 }
 0x189   :  { %v333_v61 = vpop.eup %332 }
 0x18a   :  { %v167_v63 = vmul.f32 %v333_v61, %v144_v55  ;;  %v147_v0 = vpop.xlane.xlu0 %146  ;;  %v159_v1 = vsel %vm158_vm3, %v331_v53, %v155_v60  ;;  %vm172_vm5 = vweird.f32 %v333_v61 }
 0x18b   :  { %334 = vrcp.f32 %v147_v0  ;;  %v164_v3 = vsel %vm161_vm4, %v163_v62, %v159_v1  ;;  %vm173_vm7 = vmor %vm171_vm6, %vm172_vm5  ;;  %v192_v16 = vand.u32 2147483648, %v147_v0  ;;  %v190_v19 = vand.u32 2147483647, %v147_v0 }
 0x18c   :  { %v168_v2 = vsub.f32 1.0, %v167_v63  ;;  %v165_v4 = vmul.f32 %v323_v33, %v164_v3  ;;  %vm186_vm10 = vweird.f32 %v147_v0 }
 0x18d   :  { %v193_v22 = vor.u32 1.1754944e-38, %v192_v16  ;;  %vm191_vm12 = vcmp.eq.f32.partialorder %v190_v19, 8.507059e+37 }
 0x18e   :  { %v169_v5 = vmul.f32 %v333_v61, %v168_v2  ;;  %308 = vmatmul.msk.f32.vlgmr.msra.gmra.mxu2 %vm32_vm0, %v165_v4  ;;  %314 = vmatmul.msk.f32.vlgmr.msra.gmra.mxu3 %vm32_vm0, %v165_v4 }
 0x190   :  { %v170_v8 = vadd.f32 %v333_v61, %v169_v5 }
 0x191   :  { %v335_v9 = vpop.eup %334 }
 0x192   :  { %v182_v11 = vmul.f32 %v335_v9, %v147_v0  ;;  %v150_v12 = vpop.xlane.xlu1 %149  ;;  %v174_v13 = vsel %vm173_vm7, %v333_v61, %v170_v8  ;;  %vm187_vm9 = vweird.f32 %v335_v9 }
 0x193   :  { %336 = vrcp.f32 %v150_v12  ;;  %v179_v15 = vsel %vm176_vm8, %v178_v10, %v174_v13  ;;  %vm188_vm11 = vmor %vm186_vm10, %vm187_vm9  ;;  %v207_v28 = vand.u32 2147483648, %v150_v12  ;;  %v205_v30 = vand.u32 2147483647, %v150_v12 }
 0x194   :  { %v183_v14 = vsub.f32 1.0, %v182_v11  ;;  %v180_v17 = vmul.f32 %v417_v38, %v179_v15  ;;  %vm201_vm14 = vweird.f32 %v150_v12 }
 0x195   :  { %v208_v32 = vor.u32 1.1754944e-38, %v207_v28  ;;  %vm206_vm1 = vcmp.eq.f32.partialorder %v205_v30, 8.507059e+37 }
 0x196   :  { %v184_v18 = vmul.f32 %v335_v9, %v183_v14  ;;  %309 = vmatmul.msk.f32.gmra.mxu2 %vm32_vm0, %v180_v17  ;;  %315 = vmatmul.msk.f32.gmra.mxu3 %vm32_vm0, %v180_v17 }
 0x198   :  { %v185_v20 = vadd.f32 %v335_v9, %v184_v18 }
 0x199   :  { %v337_v21 = vpop.eup %336 }
 0x19a   :  { %v197_v23 = vmul.f32 %v337_v21, %v150_v12  ;;  %v189_v24 = vsel %vm188_vm11, %v335_v9, %v185_v20  ;;  %vm202_vm13 = vweird.f32 %v337_v21 }
 0x19b   :  { %v194_v25 = vsel %vm191_vm12, %v193_v22, %v189_v24  ;;  %vm203_vm15 = vmor %vm201_vm14, %vm202_vm13 }
 0x19c   :  { %v198_v26 = vsub.f32 1.0, %v197_v23  ;;  %v195_v27 = vmul.f32 %v421_v43, %v194_v25 }
 0x19e   :  { %v199_v29 = vmul.f32 %v337_v21, %v198_v26  ;;  %310 = vmatmul.msk.f32.gmra.mxu2 %vm32_vm0, %v195_v27  ;;  %316 = vmatmul.msk.f32.gmra.mxu3 %vm32_vm0, %v195_v27 }
 0x1a0   :  { %v200_v31 = vadd.f32 %v337_v21, %v199_v29 }
 0x1a2   :  { %v204_v33 = vsel %vm203_vm15, %v337_v21, %v200_v31 }
 0x1a3   :  { %v209_v34 = vsel %vm206_vm1, %v208_v32, %v204_v33 }
 0x1a4   :  { %v210_v35 = vmul.f32 %v425_v46, %v209_v34 }
 0x1a6   :  { %311 = vmatmul.msk.f32.gmra.mxu2 %vm32_vm0, %v210_v35  ;;  %317 = vmatmul.msk.f32.gmra.mxu3 %vm32_vm0, %v210_v35 }
 0x211   :  { %v242_v36 = vpop.f32.mrf.mxu2  ;;  %v279_v37 = vpop.f32.mrf.mxu3 }
 0x212   :  { %255 = vst.msk [vmem:[%s489_s5] sm:$0xff] %vm254_vm2, %v242_v36 }
 0x213   :  { %318 = vst.msk [vmem:[%s489_s5 + $0x20] sm:$0xff] %vm254_vm2, %v279_v37 }
 0x219   :  { %v245_v38 = vpop.f32.mrf.mxu2  ;;  %v282_v39 = vpop.f32.mrf.mxu3 }
 0x21a   :  { %256 = vst.msk [vmem:[%s489_s5 + $0x8] sm:$0xff] %vm254_vm2, %v245_v38 }
 0x21b   :  { %319 = vst.msk [vmem:[%s489_s5 + $0x28] sm:$0xff] %vm254_vm2, %v282_v39 }
 0x221   :  { %v248_v40 = vpop.f32.mrf.mxu2  ;;  %v285_v41 = vpop.f32.mrf.mxu3 }
 0x222   :  { %257 = vst.msk [vmem:[%s489_s5 + $0x10] sm:$0xff] %vm254_vm2, %v248_v40 }
 0x223   :  { %320 = vst.msk [vmem:[%s489_s5 + $0x30] sm:$0xff] %vm254_vm2, %v285_v41 }
 0x229   :  { %v251_v42 = vpop.f32.mrf.mxu2  ;;  %v288_v43 = vpop.f32.mrf.mxu3 }
 0x22a   :  { %258 = vst.msk [vmem:[%s489_s5 + $0x18] sm:$0xff] %vm254_vm2, %v251_v42 }
 0x22b   :  { %321 = vst.msk [vmem:[%s489_s5 + $0x38] sm:$0xff] %vm254_vm2, %v288_v43 }

</bundles_post_ra>
